<compile_context>
chip_gen: v7x
topology: tpu7x:2x2x1
jax: 0.10.0
libtpu: 0.0.40
codegen_flags: <defaults>
</compile_context>

<pallas_src>
import jax
import jax.numpy as jnp
from jax.experimental import pallas as pl
from jax.experimental.pallas import tpu as pltpu


def _identity_copy_kernel(x_ref, o_ref):
    # Identity pass-through of one (tb, C) lane-dense block.
    o_ref[...] = x_ref[...]


def _slab_factorization(total, flat_shape, batch, itemsize):
    """Pick a lane-dense (R, C) factorization of `total` elements plus a
    row-block size tb (multiple of the sublane tile when possible), targeting
    ~2 MiB per block."""
    sub_mult = max(8, 32 // itemsize)  # 8 for f32, 16 for bf16, 32 for int8
    C = None
    for cand in (128 * 512, 128 * 256, 128 * 128, 128 * 64, 128 * 32,
                 128 * 16, 128 * 8, 128 * 4, 128 * 2, 128):
        if total % cand == 0:
            C = cand
            break
    if C is None:
        # total not a multiple of 128: fall back to the natural 2-D layout
        # (full flat_shape as the last dim is still a legal block).
        R, C = batch, flat_shape
    else:
        R = total // C

    target_bytes = 2 * 1024 * 1024
    tb = max(1, target_bytes // (C * itemsize))
    if tb >= R:
        tb = R                             # block == full dim: always legal
    elif R >= sub_mult:
        tb = max(sub_mult, (tb // sub_mult) * sub_mult)
    return R, C, tb


def mlp_view_forward(x, input_dim, channels, Dx=1, Dy=1):
    """Pallas equivalent of MLPViewModule.forward.

    x: (batch, input_dim, Dx)       for channels == 1
       (batch, input_dim, Dx, Dy)   for channels == 2
    returns: (batch, flat_shape)
    """
    if channels == 1:
        flat_shape = input_dim * Dx
    elif channels == 2:
        flat_shape = input_dim * Dx * Dy
    else:
        raise ValueError("Not implemented.")

    batch = x.shape[0]
    # The view itself (row-major, no data reordering) is metadata-only glue.
    x_flat = x.reshape(batch, flat_shape)

    total = batch * flat_shape
    itemsize = jnp.dtype(x.dtype).itemsize
    R, C, tb = _slab_factorization(total, flat_shape, batch, itemsize)
    grid_r = pl.cdiv(R, tb)

    slab = x_flat.reshape(R, C)
    out = pl.pallas_call(
        _identity_copy_kernel,
        out_shape=jax.ShapeDtypeStruct((R, C), x.dtype),
        grid=(grid_r,),
        in_specs=[pl.BlockSpec((tb, C), lambda r: (r, 0))],
        out_specs=pl.BlockSpec((tb, C), lambda r: (r, 0)),
        # Output aliases the input: no second HBM allocation for what is
        # semantically a no-op (torch .view).
        input_output_aliases={0: 0},
        compiler_params=pltpu.CompilerParams(
            dimension_semantics=("parallel",),
            vmem_limit_bytes=32 * 1024 * 1024,
        ),
    )(slab)
    return out.reshape(batch, flat_shape)


if __name__ == "__main__":
    # Small shapes consistent with the module: channels=1, input_dim=32, Dx=4.
    batch, input_dim, Dx = 2, 32, 4

    key = jax.random.PRNGKey(0)
    x = jax.random.normal(key, (batch, input_dim, Dx), dtype=jnp.float32)

    # Reference semantics: torch's x.view(batch, -1) == row-major reshape.
    y_ref = x.reshape(batch, input_dim * Dx)

    y = mlp_view_forward(x, input_dim=input_dim, channels=1, Dx=Dx)
    y = jax.block_until_ready(y)

    assert y.shape == (batch, input_dim * Dx)
    assert jnp.array_equal(y, y_ref)

    print("KERNEL_OK")
</pallas_src>

<mosaic_0001>
module attributes {stable_mosaic.version = 11 : i64} {
  func.func @_identity_copy_kernel(%arg0: i32, %arg1: memref<1x256xf32, #tpu.memory_space<vmem>>, %arg2: memref<1x256xf32, #tpu.memory_space<vmem>>) attributes {dimension_semantics = [#tpu.dimension_semantics<parallel>], iteration_bounds = array<i64: 1>, scalar_prefetch = 0 : i64, scratch_operands = 0 : i64, tpu.core_type = #tpu.core_type<tc>, window_params = [{transform_indices = @transform_0, window_bounds = array<i64: 1, 256>}, {transform_indices = @transform_1, window_bounds = array<i64: 1, 256>}]} {
    %c0 = arith.constant 0 : index
    %c0_0 = arith.constant 0 : index
    %0 = vector.load %arg1[%c0, %c0_0] : memref<1x256xf32, #tpu.memory_space<vmem>>, vector<1x256xf32>
    %c0_1 = arith.constant 0 : index
    %c0_2 = arith.constant 0 : index
    %1 = vector.load %arg2[%c0_1, %c0_2] : memref<1x256xf32, #tpu.memory_space<vmem>>, vector<1x256xf32>
    tpu.vector_store %arg2[%c0_1, %c0_2], %0 {strides = array<i32>} : memref<1x256xf32, #tpu.memory_space<vmem>>, vector<1x256xf32>,
    return
  }
  func.func @transform_0(%arg0: i32) -> (i32, i32) {
    %c0_i32 = arith.constant 0 : i32
    %c0_i32_0 = arith.constant 0 : i32
    return %arg0, %c0_i32 : i32, i32
  }
  func.func @transform_1(%arg0: i32) -> (i32, i32) {
    %c0_i32 = arith.constant 0 : i32
    %c0_i32_0 = arith.constant 0 : i32
    return %arg0, %c0_i32 : i32, i32
  }
}

</mosaic_0001>

<bundles_post_ra>
// kernel: tpu_custom_call.1
= control target key start
LH: loop header
LB: loop body
LE: loop exit
PB: predicated region body
PF: predicated region fallthrough
CT: control target
= control target key end

     0   :  { %6 = vsyncpa [#allocation3], 0  ;;  %s128_s0 = inlined_call_operand.hbm [shape: f32[1,256], index: 0, kind: input, shape index: {}, may-alias: {0,1}]   ;;  %s129_s1 = inlined_call_operand.hbm [shape: f32[1,256], index: 1, kind: output, shape index: {}, may-alias: {0,1}]  }
   0x1   :  { %7 = vsyncpa [#allocation4], 0  ;;  %s92_s6 = smov [#allocation2]   ;;  %s44_s10 = scalar_lea.hbm %s128_s0, 32 }
   0x2   :  { %s14_s7 = sshll.u32 %s92_s6, 4  ;;  %p45_p0 = scmp.ne.s32.totalorder %s128_s0, %s44_s10  ;;  %s15_s7 = int_to_ptr.vmem [resolvable:$true] %s14_s7 }
   0x3   :  { %p48_p1 = scmp.lt.u32.totalorder %s44_s10, %s128_s0 }
   0x5   :  { %p50_p2 = pnand %p48_p1, %p45_p0 }
   0x7   :  { %53 = shalt.err (!%p50_p2)
}
   0x8   :  { %s54_s15 = scalar_lea.vmem %s15_s7, 32  ;;  %p59_p4 = scmp.lt.s32.totalorder %s15_s7, %s15_s7 }
   0x9   :  { %p55_p3 = scmp.ne.s32.totalorder %s15_s7, %s54_s15  ;;  %p60_p5 = scmp.lt.s32.totalorder %s54_s15, %s54_s15 }
   0xb   :  { %p61_p6 = por %p60_p5, %p59_p4 }
   0xd   :  { %p62_p7 = pnand %p61_p6, %p55_p3 }
   0xf   :  { %65 = shalt.err (!%p62_p7)
}
  0x10   :  { %17 = dma.hbm_to_vmem [thread:$0]  %s128_s0, 32, %s15_s7, [#allocation3]  }
  0x11   :  { %88 = dma.done.wait [#allocation3], 32  }
  0x12   :  { %89 = vsyncadd [#allocation3], 4294967264  ;;  %v22_v0 = vlaneseq  ;;  %s93_s18 = smov [#allocation5]   ;;  %v21_v1 = vld [vmem:[#allocation2] sm:$0x3] }
  0x13   :  { %s33_s19 = sshll.u32 %s93_s18, 4  ;;  %s34_s19 = int_to_ptr.vmem [resolvable:$true] %s33_s19 }
  0x14   :  { %vm24_vm0 = vcmp.lt.s32.totalorder %v22_v0, 256  ;;  %s66_s20 = scalar_lea.vmem %s34_s19, 32  ;;  %p71_p9 = scmp.lt.s32.totalorder %s34_s19, %s34_s19 }
  0x15   :  { %26 = vst.msk [vmem:[#allocation5] sm:$0x3] %vm24_vm0, %v21_v1  ;;  %p67_p8 = scmp.ne.s32.totalorder %s34_s19, %s66_s20  ;;  %p72_p10 = scmp.lt.s32.totalorder %s66_s20, %s66_s20 }
  0x17   :  { %p73_p11 = por %p72_p10, %p71_p9 }
  0x19   :  { %p74_p12 = pnand %p73_p11, %p67_p8 }
  0x1b   :  { %77 = shalt.err (!%p74_p12)
}
  0x1c   :  { %s78_s0 = scalar_lea.hbm %s129_s1, 32 }
  0x1d   :  { %p79_p13 = scmp.ne.s32.totalorder %s129_s1, %s78_s0  ;;  %p82_p0 = scmp.lt.u32.totalorder %s78_s0, %s129_s1 }
  0x1f   :  { %p84_p1 = pnand %p82_p0, %p79_p13 }
  0x21   :  { %87 = shalt.err (!%p84_p1)
}
  0x22   :  { %36 = dma.vmem_to_hbm [thread:$0]  %s34_s19, 32, %s129_s1, [#allocation4]  }
  0x23   :  { %90 = dma.done.wait [#allocation4], 32  }
  0x24   :  { %91 = vsyncadd [#allocation4], 4294967264 }
  0x25   :  { %40 = vsyncpa [#allocation3], 1 }
  0x26   :  { %41 = vsyncpa [#allocation4], 1 }

</bundles_post_ra>
